<compile_context>
chip_gen: v6e
topology: v6e:2x2x1
jax: 0.10.0
libtpu: 0.0.40
codegen_flags: <defaults>
</compile_context>

<pallas_src>
import jax
import jax.numpy as jnp
from jax import lax
from jax.experimental import pallas as pl
from jax.experimental.pallas import tpu as pltpu


def _round_up(x, m):
    return ((x + m - 1) // m) * m


def _device_info():
    """(num_tensorcores_per_device, tile VMEM budget, vmem_limit clamp)."""
    try:
        kind = jax.devices()[0].device_kind.lower()
    except Exception:
        kind = ""
    if "v7" in kind:
        # v7x: 64 MiB VMEM / TensorCore, 2 TensorCores per device.
        return 2, 44 << 20, 56 << 20
    # v5e / v6e: 128 MiB VMEM, 1 TensorCore per device.
    return 1, 96 << 20, 112 << 20


def _choose_tile_rows(d, h, itemsize, budget_bytes):
    """Largest row tile (multiple of 8, <= 4096) whose working set fits VMEM.

    Working set per TensorCore:
      * weights/biases: pipeline allocates 2 buffers per input (constant
        index_map means only one is ever filled, but both cost VMEM).
      * x tile and out tile: double-buffered by the pipeline.
      * f32 intermediates (ReLU activations + pre-norm output).
    """
    weight_bytes = 2 * (2 * d * h + h + d) * itemsize
    for t in (4096, 2048, 1024, 512, 256, 128, 64, 32, 16, 8):
        io_bytes = (2 * t * d + 2 * t * d) * itemsize   # x + out, double-buffered
        scratch_bytes = t * (h + d) * 4                 # f32 h and y intermediates
        if weight_bytes + io_bytes + scratch_bytes <= budget_bytes:
            return t
    return 8


def mlp_norm_kernel(x_ref, w1_ref, b1_ref, w2_ref, b2_ref, o_ref):
    # Feed the MXU in the input dtype (f32 or bf16); accumulate in f32.
    x = x_ref[...]

    # Linear 1: (TB, D) @ (D, H) + (1, H), then ReLU.
    h = jnp.dot(x, w1_ref[...], preferred_element_type=jnp.float32) + b1_ref[...]
    h = jnp.maximum(h, 0.0)

    # Linear 2: (TB, H) @ (H, D) + (1, D).
    y = (jnp.dot(h.astype(w2_ref.dtype), w2_ref[...],
                 preferred_element_type=jnp.float32)
         + b2_ref[...])

    # F.normalize(y, dim=1): y / max(||y||_2, 1e-12)
    # rsqrt(max(sq, 1e-24)) == 1 / max(sqrt(sq), 1e-12) -> EUP rsqrt + VPU mul.
    sq = jnp.sum(y * y, axis=1, keepdims=True)
    inv = lax.rsqrt(jnp.maximum(sq, 1e-24))
    o_ref[...] = (y * inv).astype(o_ref.dtype)


def pale_mapping_mlp_rwr_forward(x, w1, b1, w2, b2, *, tile_rows=None):
    """x: (N, D). w1: (D, H), b1: (1, H), w2: (H, D), b2: (1, D). H = 2*D.

    Weights/biases are passed as full-array blocks (legal for any D/H since a
    block dim equal to the array dim satisfies the (8,128) rule), so no padding
    of D or H is needed and x / out incur zero padding traffic.
    """
    N, D = x.shape
    H = w1.shape[1]
    itemsize = jnp.dtype(x.dtype).itemsize

    n_cores, budget_bytes, vmem_clamp = _device_info()

    if tile_rows is None:
        tile_rows = _choose_tile_rows(D, H, itemsize, budget_bytes)
    # Don't make the tile larger than the (row-rounded) problem.
    tile_rows = max(8, _round_up(min(tile_rows, _round_up(N, 8)), 8))

    # Megacore split: only on v7x (2 TensorCores). Target an even number of
    # roughly equal grid steps so both cores stay busy; v5e/v6e keep one big
    # tile (splitting there only adds per-step overhead).
    if n_cores >= 2 and N > 16:
        n_tiles = pl.cdiv(N, tile_rows)
        if n_tiles < 2:
            tile_rows = max(8, _round_up(pl.cdiv(N, 2), 8))
        elif n_tiles % 2 == 1:
            tile_rows = max(8, _round_up(pl.cdiv(N, n_tiles + 1), 8))

    n_tiles = pl.cdiv(N, tile_rows)

    # Explicit VMEM limit from the actual buffer sizes (+ headroom), clamped
    # under the per-generation physical VMEM.
    weight_bytes = 2 * (2 * D * H + H + D) * itemsize
    tile_bytes = (4 * tile_rows * D) * itemsize + tile_rows * (H + D) * 4
    vmem_limit = int(min(max(weight_bytes + tile_bytes + (4 << 20), 16 << 20),
                         vmem_clamp))

    # Memory-bound cost hint for XLA's scheduler.
    cost = pl.CostEstimate(
        flops=4 * N * D * H,                                   # two matmuls
        transcendentals=N,                                     # one rsqrt per row
        bytes_accessed=(2 * N * D + 2 * D * H + H + D) * itemsize,
    )

    grid_spec = pl.GridSpec(
        grid=(n_tiles,),
        in_specs=[
            pl.BlockSpec((tile_rows, D), lambda i: (i, 0)),    # x row tile
            # Grid-invariant params: constant index_map -> DMA'd once per core.
            pl.BlockSpec((D, H), lambda i: (0, 0)),            # W1
            pl.BlockSpec((1, H), lambda i: (0, 0)),            # b1
            pl.BlockSpec((H, D), lambda i: (0, 0)),            # W2
            pl.BlockSpec((1, D), lambda i: (0, 0)),            # b2
        ],
        out_specs=pl.BlockSpec((tile_rows, D), lambda i: (i, 0)),
    )

    return pl.pallas_call(
        mlp_norm_kernel,
        out_shape=jax.ShapeDtypeStruct((N, D), x.dtype),
        grid_spec=grid_spec,
        compiler_params=pltpu.CompilerParams(
            dimension_semantics=("parallel",),
            vmem_limit_bytes=vmem_limit,
        ),
        cost_estimate=cost,
    )(x, w1, b1, w2, b2)


def reference_forward(x, w1, b1, w2, b2):
    h = jnp.maximum(x @ w1 + b1, 0.0)
    y = h @ w2 + b2
    norm = jnp.sqrt(jnp.sum(y * y, axis=1, keepdims=True))
    return y / jnp.maximum(norm, 1e-12)


if __name__ == "__main__":
    # Shapes consistent with the module: embedding_dim = 32,
    # hidden_dim = 2 * embedding_dim = 64. N = 200 is not a multiple of the
    # chosen row tile on v7x, exercising the partial-last-block path.
    N, D = 200, 32
    H = 2 * D

    key = jax.random.PRNGKey(0)
    kx, kw1, kb1, kw2, kb2 = jax.random.split(key, 5)

    x = jax.random.normal(kx, (N, D), dtype=jnp.float32)
    # PyTorch Linear weights are (out, in); stored transposed here as (in, out).
    w1 = jax.random.normal(kw1, (D, H), dtype=jnp.float32) * 0.1
    b1 = jax.random.normal(kb1, (1, H), dtype=jnp.float32) * 0.1
    w2 = jax.random.normal(kw2, (H, D), dtype=jnp.float32) * 0.1
    b2 = jax.random.normal(kb2, (1, D), dtype=jnp.float32) * 0.1

    out = pale_mapping_mlp_rwr_forward(x, w1, b1, w2, b2)
    out = jax.block_until_ready(out)

    ref = reference_forward(x, w1, b1, w2, b2)
    assert out.shape == (N, D)
    assert jnp.allclose(out, ref, atol=2e-5, rtol=2e-5), "mismatch vs reference"

    print("KERNEL_OK")
</pallas_src>

<mosaic_0001>
module attributes {stable_mosaic.version = 11 : i64} {
  func.func @mlp_norm_kernel(%arg0: i32, %arg1: memref<200x32xf32, #tpu.memory_space<vmem>>, %arg2: memref<32x64xf32, #tpu.memory_space<vmem>>, %arg3: memref<1x64xf32, #tpu.memory_space<vmem>>, %arg4: memref<64x32xf32, #tpu.memory_space<vmem>>, %arg5: memref<1x32xf32, #tpu.memory_space<vmem>>, %arg6: memref<200x32xf32, #tpu.memory_space<vmem>>) attributes {dimension_semantics = [#tpu.dimension_semantics<parallel>], iteration_bounds = array<i64: 1>, scalar_prefetch = 0 : i64, scratch_operands = 0 : i64, tpu.core_type = #tpu.core_type<tc>, window_params = [{transform_indices = @transform_0, window_bounds = array<i64: 200, 32>}, {pipeline_mode = #tpu.pipeline_mode<synchronous>, transform_indices = @transform_1, window_bounds = array<i64: 32, 64>}, {pipeline_mode = #tpu.pipeline_mode<synchronous>, transform_indices = @transform_2, window_bounds = array<i64: 1, 64>}, {pipeline_mode = #tpu.pipeline_mode<synchronous>, transform_indices = @transform_3, window_bounds = array<i64: 64, 32>}, {pipeline_mode = #tpu.pipeline_mode<synchronous>, transform_indices = @transform_4, window_bounds = array<i64: 1, 32>}, {transform_indices = @transform_5, window_bounds = array<i64: 200, 32>}]} {
    %c0 = arith.constant 0 : index
    %c0_0 = arith.constant 0 : index
    %0 = vector.load %arg1[%c0, %c0_0] : memref<200x32xf32, #tpu.memory_space<vmem>>, vector<200x32xf32>
    %c0_1 = arith.constant 0 : index
    %c0_2 = arith.constant 0 : index
    %1 = vector.load %arg2[%c0_1, %c0_2] : memref<32x64xf32, #tpu.memory_space<vmem>>, vector<32x64xf32>
    %cst = arith.constant dense<0.000000e+00> : vector<200x64xf32>
    %2 = tpu.matmul %0, %1, %cst {dimension_numbers = #tpu.dot_dimension_numbers<[1], [0], [0], [1], [0, 0, 1, 1], [], []>} : vector<200x32xf32>, vector<32x64xf32>, vector<200x64xf32> -> vector<200x64xf32>
    %c0_3 = arith.constant 0 : index
    %c0_4 = arith.constant 0 : index
    %3 = vector.load %arg3[%c0_3, %c0_4] : memref<1x64xf32, #tpu.memory_space<vmem>>, vector<1x64xf32>
    %4 = vector.broadcast %3 : vector<1x64xf32> to vector<200x64xf32>
    %5 = arith.addf %2, %4 : vector<200x64xf32>
    %cst_5 = arith.constant 0.000000e+00 : f32
    %6 = vector.broadcast %cst_5 : f32 to vector<200x64xf32>
    %7 = arith.maximumf %5, %6 : vector<200x64xf32>
    %c0_6 = arith.constant 0 : index
    %c0_7 = arith.constant 0 : index
    %8 = vector.load %arg4[%c0_6, %c0_7] : memref<64x32xf32, #tpu.memory_space<vmem>>, vector<64x32xf32>
    %cst_8 = arith.constant dense<0.000000e+00> : vector<200x32xf32>
    %9 = tpu.matmul %7, %8, %cst_8 {dimension_numbers = #tpu.dot_dimension_numbers<[1], [0], [0], [1], [0, 0, 1, 1], [], []>} : vector<200x64xf32>, vector<64x32xf32>, vector<200x32xf32> -> vector<200x32xf32>
    %c0_9 = arith.constant 0 : index
    %c0_10 = arith.constant 0 : index
    %10 = vector.load %arg5[%c0_9, %c0_10] : memref<1x32xf32, #tpu.memory_space<vmem>>, vector<1x32xf32>
    %11 = vector.broadcast %10 : vector<1x32xf32> to vector<200x32xf32>
    %12 = arith.addf %9, %11 : vector<200x32xf32>
    %13 = arith.mulf %12, %12 : vector<200x32xf32>
    %cst_11 = arith.constant dense<0.000000e+00> : vector<200xf32>
    %14 = vector.multi_reduction <add>, %13, %cst_11 [1] : vector<200x32xf32> to vector<200xf32>
    %15 = vector.shape_cast %14 : vector<200xf32> to vector<200x1xf32>
    %cst_12 = arith.constant 1.000000e-24 : f32
    %16 = vector.broadcast %cst_12 : f32 to vector<200x1xf32>
    %17 = arith.maximumf %15, %16 : vector<200x1xf32>
    %18 = math.rsqrt %17 : vector<200x1xf32>
    %19 = vector.broadcast %18 : vector<200x1xf32> to vector<200x32xf32>
    %20 = arith.mulf %12, %19 : vector<200x32xf32>
    %c0_13 = arith.constant 0 : index
    %c0_14 = arith.constant 0 : index
    %21 = vector.load %arg6[%c0_13, %c0_14] : memref<200x32xf32, #tpu.memory_space<vmem>>, vector<200x32xf32>
    tpu.vector_store %arg6[%c0_13, %c0_14], %20 {strides = array<i32>} : memref<200x32xf32, #tpu.memory_space<vmem>>, vector<200x32xf32>,
    return
  }
  func.func @transform_0(%arg0: i32) -> (i32, i32) {
    %c0_i32 = arith.constant 0 : i32
    %c0_i32_0 = arith.constant 0 : i32
    return %arg0, %c0_i32 : i32, i32
  }
  func.func @transform_1(%arg0: i32) -> (i32, i32) {
    %c0_i32 = arith.constant 0 : i32
    %c0_i32_0 = arith.constant 0 : i32
    %c0_i32_1 = arith.constant 0 : i32
    return %c0_i32, %c0_i32_0 : i32, i32
  }
  func.func @transform_2(%arg0: i32) -> (i32, i32) {
    %c0_i32 = arith.constant 0 : i32
    %c0_i32_0 = arith.constant 0 : i32
    %c0_i32_1 = arith.constant 0 : i32
    return %c0_i32, %c0_i32_0 : i32, i32
  }
  func.func @transform_3(%arg0: i32) -> (i32, i32) {
    %c0_i32 = arith.constant 0 : i32
    %c0_i32_0 = arith.constant 0 : i32
    %c0_i32_1 = arith.constant 0 : i32
    return %c0_i32, %c0_i32_0 : i32, i32
  }
  func.func @transform_4(%arg0: i32) -> (i32, i32) {
    %c0_i32 = arith.constant 0 : i32
    %c0_i32_0 = arith.constant 0 : i32
    %c0_i32_1 = arith.constant 0 : i32
    return %c0_i32, %c0_i32_0 : i32, i32
  }
  func.func @transform_5(%arg0: i32) -> (i32, i32) {
    %c0_i32 = arith.constant 0 : i32
    %c0_i32_0 = arith.constant 0 : i32
    return %arg0, %c0_i32 : i32, i32
  }
}

</mosaic_0001>

<bundles_post_ra>
// kernel: tpu_custom_call.1
= control target key start
LH: loop header
LB: loop body
LE: loop exit
PB: predicated region body
PF: predicated region fallthrough
CT: control target
= control target key end

     0   :  { %v1188_v0 = vmov 0.0   ;;  %vm1189_vm0 = vmmov 0   ;;  %vm56_vm1 = vcmask 261120   ;;  %vm362_vm2 = vcmask 523264   ;;  %s1811_s1 = inlined_call_operand.vmem [shape: f32[32,64], index: 1, kind: input, shape index: {}]   ;;  %s1812_s0 = inlined_call_operand.vmem [shape: f32[200,32], index: 0, kind: input, shape index: {}]   ;;  %s1813_s3 = inlined_call_operand.vmem [shape: f32[64,32], index: 3, kind: input, shape index: {}]   ;;  %s1814_s2 = inlined_call_operand.vmem [shape: f32[1,64], index: 2, kind: input, shape index: {}]   ;;  %s1815_s4 = inlined_call_operand.vmem [shape: f32[1,32], index: 4, kind: input, shape index: {}]   ;;  %s1816_s5 = inlined_call_operand.vmem [shape: f32[200,32], index: 5, kind: output, shape index: {}]  }
   0x1   :  { %946 = vmatprep.subr.mxu0 %v1188_v0  ;;  %v48_v1 = vld [vmem:[%s1811_s1 + $0x18] sm:$0xff]  ;;  %v47_v2 = vld [vmem:[%s1811_s1 + $0x10] sm:$0xff]  ;;  %954 = vmatprep.mubr.msk.f32.mxu0 %vm1189_vm0, %v1188_v0  ;;  %v46_v3 = vld [vmem:[%s1811_s1 + $0x8] sm:$0xff] }
   0x2   :  { %947 = vmatpush3.msra.mxu0 %v48_v1  ;;  %1120 = vmatprep.subr.mxu1 %v1188_v0  ;;  %v45_v4 = vld [vmem:[%s1811_s1] sm:$0xff]  ;;  %v21_v6 = vld [vmem:[%s1812_s0 + $0x8] sm:$0xff]  ;;  %v354_v7 = vld [vmem:[%s1813_s3 + $0x38] sm:$0xff] }
   0x3   :  { %948 = vmatprep.subr.mxu0 %v1188_v0  ;;  %1048 = vmatprep.mubr.msk.f32.mxu1 %vm1189_vm0, %v1188_v0  ;;  %v20_v5 = vld [vmem:[%s1812_s0] sm:$0xff]  ;;  %v353_v8 = vld [vmem:[%s1813_s3 + $0x30] sm:$0xff]  ;;  %v352_v9 = vld [vmem:[%s1813_s3 + $0x28] sm:$0xff] }
   0x4   :  { %949 = vmatpush3.msra.mxu0 %v47_v2  ;;  %1128 = vmatpush3.msra.mxu1 %v354_v7  ;;  %v22_v10 = vld [vmem:[%s1812_s0 + $0x10] sm:$0xff]  ;;  %v351_v11 = vld [vmem:[%s1813_s3 + $0x20] sm:$0xff]  ;;  %v350_v12 = vld [vmem:[%s1813_s3 + $0x18] sm:$0xff] }
   0x5   :  { %950 = vmatprep.subr.mxu0 %v1188_v0  ;;  %1121 = vmatprep.subr.mxu1 %v1188_v0  ;;  %v23_v13 = vld [vmem:[%s1812_s0 + $0x18] sm:$0xff]  ;;  %v24_v14 = vld [vmem:[%s1812_s0 + $0x20] sm:$0xff]  ;;  %v25_v15 = vld [vmem:[%s1812_s0 + $0x28] sm:$0xff] }
   0x6   :  { %951 = vmatpush3.msra.mxu0 %v46_v3  ;;  %1129 = vmatpush3.msra.mxu1 %v353_v8  ;;  %v26_v16 = vld [vmem:[%s1812_s0 + $0x30] sm:$0xff]  ;;  %v27_v17 = vld [vmem:[%s1812_s0 + $0x38] sm:$0xff]  ;;  %v28_v18 = vld [vmem:[%s1812_s0 + $0x40] sm:$0xff] }
   0x7   :  { %952 = vmatprep.subr.mxu0 %v1188_v0  ;;  %1122 = vmatprep.subr.mxu1 %v1188_v0  ;;  %v29_v19 = vld [vmem:[%s1812_s0 + $0x48] sm:$0xff]  ;;  %v30_v20 = vld [vmem:[%s1812_s0 + $0x50] sm:$0xff]  ;;  %v31_v21 = vld [vmem:[%s1812_s0 + $0x58] sm:$0xff] }
   0x8   :  { %953 = vmatpush3.msra.mxu0 %v45_v4  ;;  %1130 = vmatpush3.msra.mxu1 %v352_v9  ;;  %v32_v22 = vld [vmem:[%s1812_s0 + $0x60] sm:$0xff]  ;;  %v33_v23 = vld [vmem:[%s1812_s0 + $0x68] sm:$0xff]  ;;  %v34_v24 = vld [vmem:[%s1812_s0 + $0x70] sm:$0xff] }
   0x9   :  { %955 = vmatmul.mubr.msk.f32.vlgmr.msra.gmra.mxu0 %vm56_vm1, %v20_v5  ;;  %1029 = vmatprep.subr.mxu0 %v1188_v0  ;;  %v35_v25 = vld [vmem:[%s1812_s0 + $0x78] sm:$0xff]  ;;  %v36_v26 = vld [vmem:[%s1812_s0 + $0x80] sm:$0xff]  ;;  %v349_v27 = vld [vmem:[%s1813_s3 + $0x10] sm:$0xff] }
   0xa   :  { %957 = vmatprep.mubr.msk.f32.mxu0 %vm1189_vm0, %v1188_v0  ;;  %1030 = vmatpush3.msra.mxu0 %v354_v7  ;;  %v37_v28 = vld [vmem:[%s1812_s0 + $0x88] sm:$0xff]  ;;  %v347_v30 = vld [vmem:[%s1813_s3] sm:$0xff]  ;;  %v38_v31 = vld [vmem:[%s1812_s0 + $0x90] sm:$0xff] }
   0xb   :  { %1031 = vmatprep.subr.mxu0 %v1188_v0  ;;  %1123 = vmatprep.subr.mxu1 %v1188_v0  ;;  %v348_v29 = vld [vmem:[%s1813_s3 + $0x8] sm:$0xff]  ;;  %v39_v32 = vld [vmem:[%s1812_s0 + $0x98] sm:$0xff]  ;;  %v40_v33 = vld [vmem:[%s1812_s0 + $0xa0] sm:$0xff] }
   0xc   :  { %1032 = vmatpush3.msra.mxu0 %v353_v8  ;;  %1131 = vmatpush3.msra.mxu1 %v351_v11  ;;  %v41_v34 = vld [vmem:[%s1812_s0 + $0xa8] sm:$0xff]  ;;  %v42_v35 = vld [vmem:[%s1812_s0 + $0xb0] sm:$0xff]  ;;  %v43_v36 = vld [vmem:[%s1812_s0 + $0xb8] sm:$0xff] }
   0xd   :  { %958 = vmatmul.mubr.msk.f32.gmra.mxu0 %vm56_vm1, %v21_v6  ;;  %1033 = vmatprep.subr.mxu0 %v1188_v0  ;;  %v44_v37 = vld [vmem:[%s1812_s0 + $0xc0] sm:$0xff] }
   0xe   :  { %960 = vmatprep.mubr.msk.f32.mxu0 %vm1189_vm0, %v1188_v0  ;;  %1034 = vmatpush3.msra.mxu0 %v352_v9  ;;  %v1433_v38 = vld [vmem:[%s1814_s2] ss:$0 sm:$0xff] }
   0xf   :  { %1035 = vmatprep.subr.mxu0 %v1188_v0  ;;  %1124 = vmatprep.subr.mxu1 %v1188_v0 }
  0x10   :  { %1036 = vmatpush3.msra.mxu0 %v351_v11  ;;  %1132 = vmatpush3.msra.mxu1 %v350_v12 }
  0x11   :  { %961 = vmatmul.mubr.msk.f32.gmra.mxu0 %vm56_vm1, %v22_v10  ;;  %1037 = vmatprep.subr.mxu0 %v1188_v0 }
  0x12   :  { %963 = vmatprep.mubr.msk.f32.mxu0 %vm1189_vm0, %v1188_v0  ;;  %1038 = vmatpush3.msra.mxu0 %v350_v12 }
  0x13   :  { %1039 = vmatprep.subr.mxu0 %v1188_v0  ;;  %1125 = vmatprep.subr.mxu1 %v1188_v0 }
  0x14   :  { %1133 = vmatpush3.msra.mxu1 %v349_v27  ;;  %1040 = vmatpush3.msra.mxu0 %v349_v27 }
  0x15   :  { %964 = vmatmul.mubr.msk.f32.gmra.mxu0 %vm56_vm1, %v23_v13  ;;  %1041 = vmatprep.subr.mxu0 %v1188_v0 }
  0x16   :  { %966 = vmatprep.mubr.msk.f32.mxu0 %vm1189_vm0, %v1188_v0  ;;  %1126 = vmatprep.subr.mxu1 %v1188_v0 }
  0x17   :  { %1042 = vmatpush3.msra.mxu0 %v348_v29  ;;  %1134 = vmatpush3.msra.mxu1 %v348_v29 }
  0x18   :  { %1043 = vmatprep.subr.mxu0 %v1188_v0  ;;  %1127 = vmatprep.subr.mxu1 %v1188_v0 }
  0x19   :  { %967 = vmatmul.mubr.msk.f32.gmra.mxu0 %vm56_vm1, %v24_v14  ;;  %1135 = vmatpush3.msra.mxu1 %v347_v30 }
  0x1a   :  { %969 = vmatprep.mubr.msk.f32.mxu0 %vm1189_vm0, %v1188_v0  ;;  %1044 = vmatpush3.msra.mxu0 %v347_v30 }
  0x1d   :  { %970 = vmatmul.mubr.msk.f32.gmra.mxu0 %vm56_vm1, %v25_v15 }
  0x1e   :  { %972 = vmatprep.mubr.msk.f32.mxu0 %vm1189_vm0, %v1188_v0 }
  0x21   :  { %973 = vmatmul.mubr.msk.f32.gmra.mxu0 %vm56_vm1, %v26_v16 }
  0x22   :  { %975 = vmatprep.mubr.msk.f32.mxu0 %vm1189_vm0, %v1188_v0 }
  0x25   :  { %976 = vmatmul.mubr.msk.f32.gmra.mxu0 %vm56_vm1, %v27_v17 }
  0x26   :  { %978 = vmatprep.mubr.msk.f32.mxu0 %vm1189_vm0, %v1188_v0 }
  0x29   :  { %979 = vmatmul.mubr.msk.f32.gmra.mxu0 %vm56_vm1, %v28_v18 }
  0x2a   :  { %981 = vmatprep.mubr.msk.f32.mxu0 %vm1189_vm0, %v1188_v0 }
  0x2d   :  { %982 = vmatmul.mubr.msk.f32.gmra.mxu0 %vm56_vm1, %v29_v19 }
  0x2e   :  { %984 = vmatprep.mubr.msk.f32.mxu0 %vm1189_vm0, %v1188_v0 }
  0x31   :  { %985 = vmatmul.mubr.msk.f32.gmra.mxu0 %vm56_vm1, %v30_v20 }
  0x32   :  { %987 = vmatprep.mubr.msk.f32.mxu0 %vm1189_vm0, %v1188_v0 }
  0x35   :  { %988 = vmatmul.mubr.msk.f32.gmra.mxu0 %vm56_vm1, %v31_v21 }
  0x36   :  { %990 = vmatprep.mubr.msk.f32.mxu0 %vm1189_vm0, %v1188_v0 }
  0x39   :  { %991 = vmatmul.mubr.msk.f32.gmra.mxu0 %vm56_vm1, %v32_v22 }
  0x3a   :  { %993 = vmatprep.mubr.msk.f32.mxu0 %vm1189_vm0, %v1188_v0 }
  0x3d   :  { %994 = vmatmul.mubr.msk.f32.gmra.mxu0 %vm56_vm1, %v33_v23 }
  0x3e   :  { %996 = vmatprep.mubr.msk.f32.mxu0 %vm1189_vm0, %v1188_v0 }
  0x41   :  { %997 = vmatmul.mubr.msk.f32.gmra.mxu0 %vm56_vm1, %v34_v24 }
  0x42   :  { %999 = vmatprep.mubr.msk.f32.mxu0 %vm1189_vm0, %v1188_v0 }
  0x45   :  { %1000 = vmatmul.mubr.msk.f32.gmra.mxu0 %vm56_vm1, %v35_v25 }
  0x46   :  { %1002 = vmatprep.mubr.msk.f32.mxu0 %vm1189_vm0, %v1188_v0 }
  0x49   :  { %1003 = vmatmul.mubr.msk.f32.gmra.mxu0 %vm56_vm1, %v36_v26 }
  0x4a   :  { %1005 = vmatprep.mubr.msk.f32.mxu0 %vm1189_vm0, %v1188_v0 }
  0x4d   :  { %1006 = vmatmul.mubr.msk.f32.gmra.mxu0 %vm56_vm1, %v37_v28 }
  0x4e   :  { %1008 = vmatprep.mubr.msk.f32.mxu0 %vm1189_vm0, %v1188_v0 }
  0x51   :  { %1009 = vmatmul.mubr.msk.f32.gmra.mxu0 %vm56_vm1, %v38_v31 }
  0x52   :  { %1011 = vmatprep.mubr.msk.f32.mxu0 %vm1189_vm0, %v1188_v0 }
  0x55   :  { %1012 = vmatmul.mubr.msk.f32.gmra.mxu0 %vm56_vm1, %v39_v32 }
  0x56   :  { %1014 = vmatprep.mubr.msk.f32.mxu0 %vm1189_vm0, %v1188_v0 }
  0x59   :  { %1015 = vmatmul.mubr.msk.f32.gmra.mxu0 %vm56_vm1, %v40_v33 }
  0x5a   :  { %1017 = vmatprep.mubr.msk.f32.mxu0 %vm1189_vm0, %v1188_v0 }
  0x5d   :  { %1018 = vmatmul.mubr.msk.f32.gmra.mxu0 %vm56_vm1, %v41_v34 }
  0x5e   :  { %1020 = vmatprep.mubr.msk.f32.mxu0 %vm1189_vm0, %v1188_v0 }
  0x61   :  { %1021 = vmatmul.mubr.msk.f32.gmra.mxu0 %vm56_vm1, %v42_v35 }
  0x62   :  { %1023 = vmatprep.mubr.msk.f32.mxu0 %vm1189_vm0, %v1188_v0 }
  0x65   :  { %1024 = vmatmul.mubr.msk.f32.gmra.mxu0 %vm56_vm1, %v43_v36 }
  0x66   :  { %1026 = vmatprep.mubr.msk.f32.mxu0 %vm1189_vm0, %v1188_v0 }
  0x69   :  { %1027 = vmatmul.mubr.msk.f32.gmra.mxu0 %vm56_vm1, %v44_v37 }
  0x6a   :  { %1045 = vmatprep.mubr.msk.f32.mxu0 %vm1189_vm0, %v1188_v0 }
  0xc9   :  { %v198_v39 = vpop.f32.mrf.mxu0 }
  0xca   :  { %v199_v40 = vadd.f32 %v1433_v38, %v198_v39 }
  0xcb   :  { %v956_v41 = vpop.f32.mrf.mxu0 }
  0xcc   :  { %v322_v42 = vmax.f32 %v199_v40, 0.0 }
  0xcd   :  { %v203_v43 = vpop.f32.mrf.mxu0 }
  0xce   :  { %v204_v44 = vadd.f32 %v1433_v38, %v203_v43  ;;  %1046 = vmatmul.mubr.msk.f32.vlgmr.msra.gmra.mxu0 %vm362_vm2, %v322_v42 }
  0xcf   :  { %v959_v45 = vpop.f32.mrf.mxu0 }
  0xd0   :  { %v323_v46 = vmax.f32 %v204_v44, 0.0 }
  0xd1   :  { %v208_v47 = vpop.f32.mrf.mxu0 }
  0xd2   :  { %v209_v48 = vadd.f32 %v1433_v38, %v208_v47  ;;  %1049 = vmatmul.mubr.msk.f32.vlgmr.msra.gmra.mxu1 %vm362_vm2, %v323_v46 }
  0xd3   :  { %v962_v49 = vpop.f32.mrf.mxu0  ;;  %1051 = vmatprep.mubr.msk.f32.mxu1 %vm1189_vm0, %v1188_v0 }
  0xd4   :  { %v324_v50 = vmax.f32 %v209_v48, 0.0 }
  0xd5   :  { %v213_v51 = vpop.f32.mrf.mxu0 }
  0xd6   :  { %v214_v52 = vadd.f32 %v1433_v38, %v213_v51  ;;  %1052 = vmatmul.mubr.msk.f32.gmra.mxu1 %vm362_vm2, %v324_v50 }
  0xd7   :  { %v965_v53 = vpop.f32.mrf.mxu0  ;;  %1054 = vmatprep.mubr.msk.f32.mxu1 %vm1189_vm0, %v1188_v0 }
  0xd8   :  { %v325_v54 = vmax.f32 %v214_v52, 0.0 }
  0xd9   :  { %v218_v55 = vpop.f32.mrf.mxu0 }
  0xda   :  { %v219_v56 = vadd.f32 %v1433_v38, %v218_v55  ;;  %1055 = vmatmul.mubr.msk.f32.gmra.mxu1 %vm362_vm2, %v325_v54 }
  0xdb   :  { %v968_v57 = vpop.f32.mrf.mxu0  ;;  %1057 = vmatprep.mubr.msk.f32.mxu1 %vm1189_vm0, %v1188_v0 }
  0xdc   :  { %v326_v58 = vmax.f32 %v219_v56, 0.0 }
  0xdd   :  { %v223_v59 = vpop.f32.mrf.mxu0 }
  0xde   :  { %v224_v60 = vadd.f32 %v1433_v38, %v223_v59  ;;  %1058 = vmatmul.mubr.msk.f32.gmra.mxu1 %vm362_vm2, %v326_v58 }
  0xdf   :  { %v971_v61 = vpop.f32.mrf.mxu0  ;;  %1060 = vmatprep.mubr.msk.f32.mxu1 %vm1189_vm0, %v1188_v0 }
  0xe0   :  { %v327_v62 = vmax.f32 %v224_v60, 0.0 }
  0xe1   :  { %v228_v63 = vpop.f32.mrf.mxu0 }
  0xe2   :  { %v229_v1 = vadd.f32 %v1433_v38, %v228_v63  ;;  %1061 = vmatmul.mubr.msk.f32.gmra.mxu1 %vm362_vm2, %v327_v62 }
  0xe3   :  { %v974_v2 = vpop.f32.mrf.mxu0  ;;  %1063 = vmatprep.mubr.msk.f32.mxu1 %vm1189_vm0, %v1188_v0 }
  0xe4   :  { %v328_v3 = vmax.f32 %v229_v1, 0.0 }
  0xe5   :  { %v233_v4 = vpop.f32.mrf.mxu0 }
  0xe6   :  { %v234_v5 = vadd.f32 %v1433_v38, %v233_v4  ;;  %1064 = vmatmul.mubr.msk.f32.gmra.mxu1 %vm362_vm2, %v328_v3 }
  0xe7   :  { %v977_v6 = vpop.f32.mrf.mxu0  ;;  %1066 = vmatprep.mubr.msk.f32.mxu1 %vm1189_vm0, %v1188_v0 }
  0xe8   :  { %v329_v7 = vmax.f32 %v234_v5, 0.0 }
  0xe9   :  { %v238_v8 = vpop.f32.mrf.mxu0 }
  0xea   :  { %v239_v9 = vadd.f32 %v1433_v38, %v238_v8  ;;  %1067 = vmatmul.mubr.msk.f32.gmra.mxu1 %vm362_vm2, %v329_v7 }
  0xeb   :  { %v980_v10 = vpop.f32.mrf.mxu0  ;;  %1069 = vmatprep.mubr.msk.f32.mxu1 %vm1189_vm0, %v1188_v0 }
  0xec   :  { %v330_v11 = vmax.f32 %v239_v9, 0.0 }
  0xed   :  { %v243_v12 = vpop.f32.mrf.mxu0 }
  0xee   :  { %v244_v13 = vadd.f32 %v1433_v38, %v243_v12  ;;  %1070 = vmatmul.mubr.msk.f32.gmra.mxu1 %vm362_vm2, %v330_v11 }
  0xef   :  { %v983_v14 = vpop.f32.mrf.mxu0  ;;  %1072 = vmatprep.mubr.msk.f32.mxu1 %vm1189_vm0, %v1188_v0 }
  0xf0   :  { %v331_v15 = vmax.f32 %v244_v13, 0.0  ;;  %v1534_v14 = vld [vmem:[%s1815_s4] ss:$0 sm:$0xff] }
  0xf1   :  { %v248_v16 = vpop.f32.mrf.mxu0 }
  0xf2   :  { %v249_v17 = vadd.f32 %v1433_v38, %v248_v16  ;;  %1073 = vmatmul.mubr.msk.f32.gmra.mxu1 %vm362_vm2, %v331_v15 }
  0xf3   :  { %v986_v18 = vpop.f32.mrf.mxu0  ;;  %1075 = vmatprep.mubr.msk.f32.mxu1 %vm1189_vm0, %v1188_v0 }
  0xf4   :  { %v332_v19 = vmax.f32 %v249_v17, 0.0 }
  0xf5   :  { %v253_v20 = vpop.f32.mrf.mxu0 }
  0xf6   :  { %v254_v21 = vadd.f32 %v1433_v38, %v253_v20  ;;  %1076 = vmatmul.mubr.msk.f32.gmra.mxu1 %vm362_vm2, %v332_v19 }
  0xf7   :  { %v989_v22 = vpop.f32.mrf.mxu0  ;;  %1078 = vmatprep.mubr.msk.f32.mxu1 %vm1189_vm0, %v1188_v0 }
  0xf8   :  { %v333_v23 = vmax.f32 %v254_v21, 0.0 }
  0xf9   :  { %v258_v24 = vpop.f32.mrf.mxu0 }
  0xfa   :  { %v259_v25 = vadd.f32 %v1433_v38, %v258_v24  ;;  %1079 = vmatmul.mubr.msk.f32.gmra.mxu1 %vm362_vm2, %v333_v23 }
  0xfb   :  { %v992_v26 = vpop.f32.mrf.mxu0  ;;  %1081 = vmatprep.mubr.msk.f32.mxu1 %vm1189_vm0, %v1188_v0 }
  0xfc   :  { %v334_v27 = vmax.f32 %v259_v25, 0.0 }
  0xfd   :  { %v263_v28 = vpop.f32.mrf.mxu0 }
  0xfe   :  { %v264_v29 = vadd.f32 %v1433_v38, %v263_v28  ;;  %1082 = vmatmul.mubr.msk.f32.gmra.mxu1 %vm362_vm2, %v334_v27 }
  0xff   :  { %v995_v30 = vpop.f32.mrf.mxu0  ;;  %1084 = vmatprep.mubr.msk.f32.mxu1 %vm1189_vm0, %v1188_v0 }
 0x100   :  { %v335_v31 = vmax.f32 %v264_v29, 0.0 }
 0x101   :  { %v268_v32 = vpop.f32.mrf.mxu0 }
 0x102   :  { %v269_v33 = vadd.f32 %v1433_v38, %v268_v32  ;;  %1085 = vmatmul.mubr.msk.f32.gmra.mxu1 %vm362_vm2, %v335_v31 }
 0x103   :  { %v998_v34 = vpop.f32.mrf.mxu0  ;;  %1087 = vmatprep.mubr.msk.f32.mxu1 %vm1189_vm0, %v1188_v0 }
 0x104   :  { %v336_v35 = vmax.f32 %v269_v33, 0.0 }
 0x105   :  { %v273_v36 = vpop.f32.mrf.mxu0 }
 0x106   :  { %v274_v37 = vadd.f32 %v1433_v38, %v273_v36  ;;  %1088 = vmatmul.mubr.msk.f32.gmra.mxu1 %vm362_vm2, %v336_v35 }
 0x107   :  { %v1001_v39 = vpop.f32.mrf.mxu0  ;;  %1090 = vmatprep.mubr.msk.f32.mxu1 %vm1189_vm0, %v1188_v0 }
 0x108   :  { %v337_v40 = vmax.f32 %v274_v37, 0.0 }
 0x109   :  { %v278_v41 = vpop.f32.mrf.mxu0 }
 0x10a   :  { %v279_v42 = vadd.f32 %v1433_v38, %v278_v41  ;;  %1091 = vmatmul.mubr.msk.f32.gmra.mxu1 %vm362_vm2, %v337_v40 }
 0x10b   :  { %v1004_v43 = vpop.f32.mrf.mxu0  ;;  %1093 = vmatprep.mubr.msk.f32.mxu1 %vm1189_vm0, %v1188_v0 }
 0x10c   :  { %v338_v44 = vmax.f32 %v279_v42, 0.0 }
 0x10d   :  { %v283_v45 = vpop.f32.mrf.mxu0 }
 0x10e   :  { %v284_v46 = vadd.f32 %v1433_v38, %v283_v45  ;;  %1094 = vmatmul.mubr.msk.f32.gmra.mxu1 %vm362_vm2, %v338_v44 }
 0x10f   :  { %v1007_v47 = vpop.f32.mrf.mxu0  ;;  %1096 = vmatprep.mubr.msk.f32.mxu1 %vm1189_vm0, %v1188_v0 }
 0x110   :  { %v339_v48 = vmax.f32 %v284_v46, 0.0 }
 0x111   :  { %v288_v49 = vpop.f32.mrf.mxu0 }
 0x112   :  { %v289_v50 = vadd.f32 %v1433_v38, %v288_v49  ;;  %1097 = vmatmul.mubr.msk.f32.gmra.mxu1 %vm362_vm2, %v339_v48 }
 0x113   :  { %v1010_v51 = vpop.f32.mrf.mxu0  ;;  %1099 = vmatprep.mubr.msk.f32.mxu1 %vm1189_vm0, %v1188_v0 }
 0x114   :  { %v340_v52 = vmax.f32 %v289_v50, 0.0 }
 0x115   :  { %v293_v53 = vpop.f32.mrf.mxu0 }
 0x116   :  { %v294_v54 = vadd.f32 %v1433_v38, %v293_v53  ;;  %1100 = vmatmul.mubr.msk.f32.gmra.mxu1 %vm362_vm2, %v340_v52 }
 0x117   :  { %v1013_v55 = vpop.f32.mrf.mxu0  ;;  %1102 = vmatprep.mubr.msk.f32.mxu1 %vm1189_vm0, %v1188_v0 }
 0x118   :  { %v341_v56 = vmax.f32 %v294_v54, 0.0 }
 0x119   :  { %v298_v57 = vpop.f32.mrf.mxu0 }
 0x11a   :  { %v299_v58 = vadd.f32 %v1433_v38, %v298_v57  ;;  %1103 = vmatmul.mubr.msk.f32.gmra.mxu1 %vm362_vm2, %v341_v56 }
 0x11b   :  { %v1016_v59 = vpop.f32.mrf.mxu0  ;;  %1105 = vmatprep.mubr.msk.f32.mxu1 %vm1189_vm0, %v1188_v0 }
 0x11c   :  { %v342_v60 = vmax.f32 %v299_v58, 0.0 }
 0x11d   :  { %v303_v61 = vpop.f32.mrf.mxu0 }
 0x11e   :  { %v304_v62 = vadd.f32 %v1433_v38, %v303_v61  ;;  %1106 = vmatmul.mubr.msk.f32.gmra.mxu1 %vm362_vm2, %v342_v60 }
 0x11f   :  { %v1019_v63 = vpop.f32.mrf.mxu0  ;;  %1108 = vmatprep.mubr.msk.f32.mxu1 %vm1189_vm0, %v1188_v0 }
 0x120   :  { %v343_v1 = vmax.f32 %v304_v62, 0.0 }
 0x121   :  { %v308_v2 = vpop.f32.mrf.mxu0 }
 0x122   :  { %v309_v3 = vadd.f32 %v1433_v38, %v308_v2  ;;  %1109 = vmatmul.mubr.msk.f32.gmra.mxu1 %vm362_vm2, %v343_v1 }
 0x123   :  { %v1022_v4 = vpop.f32.mrf.mxu0  ;;  %1111 = vmatprep.mubr.msk.f32.mxu1 %vm1189_vm0, %v1188_v0 }
 0x124   :  { %v344_v5 = vmax.f32 %v309_v3, 0.0 }
 0x125   :  { %v313_v6 = vpop.f32.mrf.mxu0 }
 0x126   :  { %v314_v7 = vadd.f32 %v1433_v38, %v313_v6  ;;  %1112 = vmatmul.mubr.msk.f32.gmra.mxu1 %vm362_vm2, %v344_v5 }
 0x127   :  { %v1025_v8 = vpop.f32.mrf.mxu0  ;;  %1114 = vmatprep.mubr.msk.f32.mxu1 %vm1189_vm0, %v1188_v0 }
 0x128   :  { %v345_v9 = vmax.f32 %v314_v7, 0.0 }
 0x129   :  { %v318_v10 = vpop.f32.mrf.mxu0 }
 0x12a   :  { %v319_v11 = vadd.f32 %v1433_v38, %v318_v10  ;;  %1115 = vmatmul.mubr.msk.f32.gmra.mxu1 %vm362_vm2, %v345_v9 }
 0x12b   :  { %v1028_v12 = vpop.f32.mrf.mxu0  ;;  %1117 = vmatprep.mubr.msk.f32.mxu1 %vm1189_vm0, %v1188_v0 }
 0x12c   :  { %v346_v13 = vmax.f32 %v319_v11, 0.0 }
 0x12e   :  { %1118 = vmatmul.mubr.msk.f32.gmra.mxu1 %vm362_vm2, %v346_v13 }
 0x18e   :  { %v504_v15 = vpop.f32.mrf.mxu0 }
 0x18f   :  { %v1537_v16 = vadd.f32 %v1534_v14, %v504_v15 }
 0x190   :  { %v1047_v17 = vpop.f32.mrf.mxu0 }
 0x191   :  { %v628_v38 = vmul.f32 %v1537_v16, %v1537_v16 }
 0x192   :  { %v509_v18 = vpop.f32.mrf.mxu1 }
 0x193   :  { %v1542_v19 = vadd.f32 %v1534_v14, %v509_v18  ;;  %v653_v0 = vsel %vm56_vm1, %v628_v38, 0.0 }
 0x194   :  { %v1050_v20 = vpop.f32.mrf.mxu1  ;;  %654 = vadd.xlane.f32.xlu0 %v653_v0 }
 0x195   :  { %v629_v21 = vmul.f32 %v1542_v19, %v1542_v19 }
 0x196   :  { %v514_v22 = vpop.f32.mrf.mxu1 }
 0x197   :  { %v1548_v23 = vadd.f32 %v1534_v14, %v514_v22  ;;  %v656_v24 = vsel %vm56_vm1, %v629_v21, 0.0 }
 0x198   :  { %v1053_v25 = vpop.f32.mrf.mxu1  ;;  %657 = vadd.xlane.f32.xlu0 %v656_v24 }
 0x199   :  { %v630_v26 = vmul.f32 %v1548_v23, %v1548_v23 }
 0x19a   :  { %v519_v27 = vpop.f32.mrf.mxu1 }
 0x19b   :  { %v1554_v28 = vadd.f32 %v1534_v14, %v519_v27  ;;  %v659_v29 = vsel %vm56_vm1, %v630_v26, 0.0 }
 0x19c   :  { %660 = vadd.xlane.f32.xlu1 %v659_v29  ;;  %v1056_v30 = vpop.f32.mrf.mxu1 }
 0x19d   :  { %v631_v31 = vmul.f32 %v1554_v28, %v1554_v28 }
 0x19e   :  { %v524_v32 = vpop.f32.mrf.mxu1 }
 0x19f   :  { %v1560_v33 = vadd.f32 %v1534_v14, %v524_v32  ;;  %v662_v34 = vsel %vm56_vm1, %v631_v31, 0.0 }
 0x1a0   :  { %663 = vadd.xlane.f32.xlu1 %v662_v34  ;;  %v1059_v35 = vpop.f32.mrf.mxu1 }
 0x1a1   :  { %v632_v36 = vmul.f32 %v1560_v33, %v1560_v33 }
 0x1a2   :  { %v529_v37 = vpop.f32.mrf.mxu1 }
 0x1a3   :  { %v1566_v39 = vadd.f32 %v1534_v14, %v529_v37  ;;  %v665_v40 = vsel %vm56_vm1, %v632_v36, 0.0 }
 0x1a4   :  { %v1062_v41 = vpop.f32.mrf.mxu1  ;;  %666 = vadd.xlane.f32.xlu0 %v665_v40 }
 0x1a5   :  { %v633_v42 = vmul.f32 %v1566_v39, %v1566_v39 }
 0x1a6   :  { %v534_v43 = vpop.f32.mrf.mxu1 }
 0x1a7   :  { %v1572_v44 = vadd.f32 %v1534_v14, %v534_v43  ;;  %v668_v45 = vsel %vm56_vm1, %v633_v42, 0.0 }
 0x1a8   :  { %669 = vadd.xlane.f32.xlu1 %v668_v45  ;;  %v1065_v46 = vpop.f32.mrf.mxu1 }
 0x1a9   :  { %v634_v47 = vmul.f32 %v1572_v44, %v1572_v44 }
 0x1aa   :  { %v539_v48 = vpop.f32.mrf.mxu1 }
 0x1ab   :  { %v1578_v49 = vadd.f32 %v1534_v14, %v539_v48  ;;  %v671_v50 = vsel %vm56_vm1, %v634_v47, 0.0 }
 0x1ac   :  { %v1068_v51 = vpop.f32.mrf.mxu1  ;;  %672 = vadd.xlane.f32.xlu0 %v671_v50 }
 0x1ad   :  { %v635_v52 = vmul.f32 %v1578_v49, %v1578_v49 }
 0x1ae   :  { %v544_v53 = vpop.f32.mrf.mxu1 }
 0x1af   :  { %v1584_v54 = vadd.f32 %v1534_v14, %v544_v53  ;;  %v674_v55 = vsel %vm56_vm1, %v635_v52, 0.0 }
 0x1b0   :  { %675 = vadd.xlane.f32.xlu1 %v674_v55  ;;  %v1071_v56 = vpop.f32.mrf.mxu1 }
 0x1b1   :  { %v636_v57 = vmul.f32 %v1584_v54, %v1584_v54 }
 0x1b2   :  { %v549_v58 = vpop.f32.mrf.mxu1 }
 0x1b3   :  { %v1590_v59 = vadd.f32 %v1534_v14, %v549_v58  ;;  %v677_v60 = vsel %vm56_vm1, %v636_v57, 0.0 }
 0x1b4   :  { %v1074_v61 = vpop.f32.mrf.mxu1  ;;  %678 = vadd.xlane.f32.xlu0 %v677_v60 }
 0x1b5   :  { %v637_v62 = vmul.f32 %v1590_v59, %v1590_v59 }
 0x1b6   :  { %v554_v63 = vpop.f32.mrf.mxu1 }
 0x1b7   :  { %v1596_v1 = vadd.f32 %v1534_v14, %v554_v63  ;;  %v680_v2 = vsel %vm56_vm1, %v637_v62, 0.0 }
 0x1b8   :  { %681 = vadd.xlane.f32.xlu1 %v680_v2  ;;  %v1077_v3 = vpop.f32.mrf.mxu1 }
 0x1b9   :  { %v638_v4 = vmul.f32 %v1596_v1, %v1596_v1 }
 0x1ba   :  { %v559_v5 = vpop.f32.mrf.mxu1 }
 0x1bb   :  { %v1602_v6 = vadd.f32 %v1534_v14, %v559_v5  ;;  %v683_v7 = vsel %vm56_vm1, %v638_v4, 0.0 }
 0x1bc   :  { %v1080_v8 = vpop.f32.mrf.mxu1  ;;  %684 = vadd.xlane.f32.xlu0 %v683_v7 }
 0x1bd   :  { %v639_v9 = vmul.f32 %v1602_v6, %v1602_v6 }
 0x1be   :  { %v564_v10 = vpop.f32.mrf.mxu1 }
 0x1bf   :  { %v1608_v11 = vadd.f32 %v1534_v14, %v564_v10  ;;  %v686_v12 = vsel %vm56_vm1, %v639_v9, 0.0 }
 0x1c0   :  { %687 = vadd.xlane.f32.xlu1 %v686_v12  ;;  %v1083_v13 = vpop.f32.mrf.mxu1 }
 0x1c1   :  { %v640_v15 = vmul.f32 %v1608_v11, %v1608_v11 }
 0x1c2   :  { %v569_v17 = vpop.f32.mrf.mxu1 }
 0x1c3   :  { %v1614_v38 = vadd.f32 %v1534_v14, %v569_v17  ;;  %v689_v18 = vsel %vm56_vm1, %v640_v15, 0.0 }
 0x1c4   :  { %v1086_v0 = vpop.f32.mrf.mxu1  ;;  %690 = vadd.xlane.f32.xlu0 %v689_v18 }
 0x1c5   :  { %v641_v20 = vmul.f32 %v1614_v38, %v1614_v38 }
 0x1c6   :  { %v574_v21 = vpop.f32.mrf.mxu1 }
 0x1c7   :  { %v1620_v22 = vadd.f32 %v1534_v14, %v574_v21  ;;  %v692_v24 = vsel %vm56_vm1, %v641_v20, 0.0 }
 0x1c8   :  { %693 = vadd.xlane.f32.xlu1 %v692_v24  ;;  %v1089_v25 = vpop.f32.mrf.mxu1 }
 0x1c9   :  { %v642_v26 = vmul.f32 %v1620_v22, %v1620_v22 }
 0x1ca   :  { %v579_v27 = vpop.f32.mrf.mxu1 }
 0x1cb   :  { %v1626_v29 = vadd.f32 %v1534_v14, %v579_v27  ;;  %v695_v30 = vsel %vm56_vm1, %v642_v26, 0.0 }
 0x1cc   :  { %v1092_v31 = vpop.f32.mrf.mxu1  ;;  %696 = vadd.xlane.f32.xlu0 %v695_v30 }
 0x1cd   :  { %v643_v32 = vmul.f32 %v1626_v29, %v1626_v29 }
 0x1ce   :  { %v584_v34 = vpop.f32.mrf.mxu1 }
 0x1cf   :  { %v1632_v35 = vadd.f32 %v1534_v14, %v584_v34  ;;  %v698_v36 = vsel %vm56_vm1, %v643_v32, 0.0 }
 0x1d0   :  { %699 = vadd.xlane.f32.xlu1 %v698_v36  ;;  %v1095_v37 = vpop.f32.mrf.mxu1 }
 0x1d1   :  { %v644_v40 = vmul.f32 %v1632_v35, %v1632_v35 }
 0x1d2   :  { %v589_v41 = vpop.f32.mrf.mxu1 }
 0x1d3   :  { %v1638_v42 = vadd.f32 %v1534_v14, %v589_v41  ;;  %v701_v43 = vsel %vm56_vm1, %v644_v40, 0.0 }
 0x1d4   :  { %v1098_v45 = vpop.f32.mrf.mxu1  ;;  %702 = vadd.xlane.f32.xlu0 %v701_v43 }
 0x1d5   :  { %v645_v46 = vmul.f32 %v1638_v42, %v1638_v42 }
 0x1d6   :  { %v594_v47 = vpop.f32.mrf.mxu1 }
 0x1d7   :  { %v1644_v48 = vadd.f32 %v1534_v14, %v594_v47  ;;  %v704_v50 = vsel %vm56_vm1, %v645_v46, 0.0 }
 0x1d8   :  { %705 = vadd.xlane.f32.xlu1 %v704_v50  ;;  %v1101_v51 = vpop.f32.mrf.mxu1 }
 0x1d9   :  { %v646_v52 = vmul.f32 %v1644_v48, %v1644_v48 }
 0x1da   :  { %v599_v53 = vpop.f32.mrf.mxu1 }
 0x1db   :  { %v1650_v55 = vadd.f32 %v1534_v14, %v599_v53  ;;  %v707_v56 = vsel %vm56_vm1, %v646_v52, 0.0 }
 0x1dc   :  { %v1104_v57 = vpop.f32.mrf.mxu1  ;;  %708 = vadd.xlane.f32.xlu0 %v707_v56 }
 0x1dd   :  { %v647_v58 = vmul.f32 %v1650_v55, %v1650_v55 }
 0x1de   :  { %v604_v60 = vpop.f32.mrf.mxu1 }
 0x1df   :  { %v1656_v61 = vadd.f32 %v1534_v14, %v604_v60  ;;  %v710_v62 = vsel %vm56_vm1, %v647_v58, 0.0 }
 0x1e0   :  { %711 = vadd.xlane.f32.xlu1 %v710_v62  ;;  %v1107_v63 = vpop.f32.mrf.mxu1 }
 0x1e1   :  { %v648_v2 = vmul.f32 %v1656_v61, %v1656_v61 }
 0x1e2   :  { %v609_v3 = vpop.f32.mrf.mxu1 }
 0x1e3   :  { %v1662_v4 = vadd.f32 %v1534_v14, %v609_v3  ;;  %v713_v5 = vsel %vm56_vm1, %v648_v2, 0.0 }
 0x1e4   :  { %v1110_v7 = vpop.f32.mrf.mxu1  ;;  %714 = vadd.xlane.f32.xlu0 %v713_v5 }
 0x1e5   :  { %v649_v8 = vmul.f32 %v1662_v4, %v1662_v4 }
 0x1e6   :  { %v614_v9 = vpop.f32.mrf.mxu1 }
 0x1e7   :  { %v1668_v10 = vadd.f32 %v1534_v14, %v614_v9  ;;  %v716_v12 = vsel %vm56_vm1, %v649_v8, 0.0 }
 0x1e8   :  { %717 = vadd.xlane.f32.xlu1 %v716_v12  ;;  %v1113_v13 = vpop.f32.mrf.mxu1 }
 0x1e9   :  { %v650_v15 = vmul.f32 %v1668_v10, %v1668_v10 }
 0x1ea   :  { %v619_v17 = vpop.f32.mrf.mxu1 }
 0x1eb   :  { %v1674_v18 = vadd.f32 %v1534_v14, %v619_v17  ;;  %v719_v0 = vsel %vm56_vm1, %v650_v15, 0.0 }
 0x1ec   :  { %v1116_v20 = vpop.f32.mrf.mxu1  ;;  %720 = vadd.xlane.f32.xlu0 %v719_v0 }
 0x1ed   :  { %v651_v21 = vmul.f32 %v1674_v18, %v1674_v18 }
 0x1ee   :  { %v624_v24 = vpop.f32.mrf.mxu1 }
 0x1ef   :  { %v1680_v25 = vadd.f32 %v1534_v14, %v624_v24  ;;  %v722_v26 = vsel %vm56_vm1, %v651_v21, 0.0 }
 0x1f0   :  { %723 = vadd.xlane.f32.xlu1 %v722_v26  ;;  %v1119_v27 = vpop.f32.mrf.mxu1 }
 0x1f1   :  { %v652_v30 = vmul.f32 %v1680_v25, %v1680_v25 }
 0x1f3   :  { %v725_v31 = vsel %vm56_vm1, %v652_v30, 0.0 }
 0x1f4   :  { %726 = vadd.xlane.f32.xlu0 %v725_v31 }
 0x21d   :  { %v655_v32 = vpop.xlane.xlu0 %654 }
 0x21e   :  { %v728_v34 = vmax.f32 %v655_v32, 1e-24 }
 0x220   :  { %1138 = vrsqrt.f32 %v728_v34 }
 0x221   :  { %v658_v36 = vpop.xlane.xlu0 %657 }
 0x222   :  { %v729_v37 = vmax.f32 %v658_v36, 1e-24 }
 0x224   :  { %1140 = vrsqrt.f32 %v729_v37 }
 0x225   :  { %v661_v40 = vpop.xlane.xlu1 %660 }
 0x226   :  { %v730_v41 = vmax.f32 %v661_v40, 1e-24 }
 0x228   :  { %1142 = vrsqrt.f32 %v730_v41 }
 0x229   :  { %v664_v14 = vpop.xlane.xlu1 %663 }
 0x22a   :  { %v731_v43 = vmax.f32 %v664_v14, 1e-24 }
 0x22c   :  { %1144 = vrsqrt.f32 %v731_v43 }
 0x22d   :  { %v1139_v45 = vpop.eup %1138  ;;  %v667_v46 = vpop.xlane.xlu0 %666 }
 0x22e   :  { %v778_v47 = vmul.f32 %v1139_v45, %v1537_v16  ;;  %v732_v50 = vmax.f32 %v667_v46, 1e-24 }
 0x230   :  { %803 = vst.msk [vmem:[%s1816_s5] sm:$0xff] %vm56_vm1, %v778_v47  ;;  %1146 = vrsqrt.f32 %v732_v50 }
 0x231   :  { %v1141_v51 = vpop.eup %1140  ;;  %v670_v52 = vpop.xlane.xlu1 %669 }
 0x232   :  { %v779_v53 = vmul.f32 %v1141_v51, %v1542_v19  ;;  %v733_v56 = vmax.f32 %v670_v52, 1e-24 }
 0x234   :  { %804 = vst.msk [vmem:[%s1816_s5 + $0x8] sm:$0xff] %vm56_vm1, %v779_v53  ;;  %1148 = vrsqrt.f32 %v733_v56 }
 0x235   :  { %v1143_v57 = vpop.eup %1142  ;;  %v673_v16 = vpop.xlane.xlu0 %672 }
 0x236   :  { %v780_v58 = vmul.f32 %v1143_v57, %v1548_v23  ;;  %v734_v60 = vmax.f32 %v673_v16, 1e-24 }
 0x238   :  { %805 = vst.msk [vmem:[%s1816_s5 + $0x10] sm:$0xff] %vm56_vm1, %v780_v58  ;;  %1150 = vrsqrt.f32 %v734_v60 }
 0x239   :  { %v1145_v62 = vpop.eup %1144  ;;  %v676_v19 = vpop.xlane.xlu1 %675 }
 0x23a   :  { %v781_v63 = vmul.f32 %v1145_v62, %v1554_v28  ;;  %v735_v2 = vmax.f32 %v676_v19, 1e-24 }
 0x23c   :  { %806 = vst.msk [vmem:[%s1816_s5 + $0x18] sm:$0xff] %vm56_vm1, %v781_v63  ;;  %1152 = vrsqrt.f32 %v735_v2 }
 0x23d   :  { %v1147_v3 = vpop.eup %1146  ;;  %v679_v23 = vpop.xlane.xlu0 %678 }
 0x23e   :  { %v782_v5 = vmul.f32 %v1147_v3, %v1560_v33  ;;  %v736_v7 = vmax.f32 %v679_v23, 1e-24 }
 0x240   :  { %807 = vst.msk [vmem:[%s1816_s5 + $0x20] sm:$0xff] %vm56_vm1, %v782_v5  ;;  %1154 = vrsqrt.f32 %v736_v7 }
 0x241   :  { %v1149_v8 = vpop.eup %1148  ;;  %v682_v28 = vpop.xlane.xlu1 %681 }
 0x242   :  { %v783_v9 = vmul.f32 %v1149_v8, %v1566_v39  ;;  %v737_v12 = vmax.f32 %v682_v28, 1e-24 }
 0x244   :  { %808 = vst.msk [vmem:[%s1816_s5 + $0x28] sm:$0xff] %vm56_vm1, %v783_v9  ;;  %1156 = vrsqrt.f32 %v737_v12 }
 0x245   :  { %v1151_v13 = vpop.eup %1150  ;;  %v685_v33 = vpop.xlane.xlu0 %684 }
 0x246   :  { %v784_v15 = vmul.f32 %v1151_v13, %v1572_v44  ;;  %v738_v17 = vmax.f32 %v685_v33, 1e-24 }
 0x248   :  { %809 = vst.msk [vmem:[%s1816_s5 + $0x30] sm:$0xff] %vm56_vm1, %v784_v15  ;;  %1158 = vrsqrt.f32 %v738_v17 }
 0x249   :  { %v1153_v0 = vpop.eup %1152  ;;  %v688_v39 = vpop.xlane.xlu1 %687 }
 0x24a   :  { %v785_v20 = vmul.f32 %v1153_v0, %v1578_v49  ;;  %v739_v21 = vmax.f32 %v688_v39, 1e-24 }
 0x24c   :  { %810 = vst.msk [vmem:[%s1816_s5 + $0x38] sm:$0xff] %vm56_vm1, %v785_v20  ;;  %1160 = vrsqrt.f32 %v739_v21 }
 0x24d   :  { %v1155_v24 = vpop.eup %1154  ;;  %v691_v44 = vpop.xlane.xlu0 %690 }
 0x24e   :  { %v786_v26 = vmul.f32 %v1155_v24, %v1584_v54  ;;  %v740_v27 = vmax.f32 %v691_v44, 1e-24 }
 0x250   :  { %811 = vst.msk [vmem:[%s1816_s5 + $0x40] sm:$0xff] %vm56_vm1, %v786_v26  ;;  %1162 = vrsqrt.f32 %v740_v27 }
 0x251   :  { %v1157_v30 = vpop.eup %1156  ;;  %v694_v49 = vpop.xlane.xlu1 %693 }
 0x252   :  { %v787_v31 = vmul.f32 %v1157_v30, %v1590_v59  ;;  %v741_v32 = vmax.f32 %v694_v49, 1e-24 }
 0x254   :  { %812 = vst.msk [vmem:[%s1816_s5 + $0x48] sm:$0xff] %vm56_vm1, %v787_v31  ;;  %1164 = vrsqrt.f32 %v741_v32 }
 0x255   :  { %v1159_v34 = vpop.eup %1158  ;;  %v697_v54 = vpop.xlane.xlu0 %696 }
 0x256   :  { %v788_v36 = vmul.f32 %v1159_v34, %v1596_v1  ;;  %v742_v37 = vmax.f32 %v697_v54, 1e-24 }
 0x258   :  { %813 = vst.msk [vmem:[%s1816_s5 + $0x50] sm:$0xff] %vm56_vm1, %v788_v36  ;;  %1166 = vrsqrt.f32 %v742_v37 }
 0x259   :  { %v1161_v40 = vpop.eup %1160  ;;  %v700_v59 = vpop.xlane.xlu1 %699 }
 0x25a   :  { %v789_v41 = vmul.f32 %v1161_v40, %v1602_v6  ;;  %v743_v14 = vmax.f32 %v700_v59, 1e-24 }
 0x25c   :  { %814 = vst.msk [vmem:[%s1816_s5 + $0x58] sm:$0xff] %vm56_vm1, %v789_v41  ;;  %1168 = vrsqrt.f32 %v743_v14 }
 0x25d   :  { %v1163_v43 = vpop.eup %1162  ;;  %v703_v1 = vpop.xlane.xlu0 %702 }
 0x25e   :  { %v790_v45 = vmul.f32 %v1163_v43, %v1608_v11  ;;  %v744_v46 = vmax.f32 %v703_v1, 1e-24 }
 0x260   :  { %815 = vst.msk [vmem:[%s1816_s5 + $0x60] sm:$0xff] %vm56_vm1, %v790_v45  ;;  %1170 = vrsqrt.f32 %v744_v46 }
 0x261   :  { %v1165_v47 = vpop.eup %1164  ;;  %v706_v6 = vpop.xlane.xlu1 %705 }
 0x262   :  { %v791_v50 = vmul.f32 %v1165_v47, %v1614_v38  ;;  %v745_v51 = vmax.f32 %v706_v6, 1e-24 }
 0x264   :  { %816 = vst.msk [vmem:[%s1816_s5 + $0x68] sm:$0xff] %vm56_vm1, %v791_v50  ;;  %1172 = vrsqrt.f32 %v745_v51 }
 0x265   :  { %v1167_v52 = vpop.eup %1166  ;;  %v709_v11 = vpop.xlane.xlu0 %708 }
 0x266   :  { %v792_v53 = vmul.f32 %v1167_v52, %v1620_v22  ;;  %v746_v56 = vmax.f32 %v709_v11, 1e-24 }
 0x268   :  { %817 = vst.msk [vmem:[%s1816_s5 + $0x70] sm:$0xff] %vm56_vm1, %v792_v53  ;;  %1174 = vrsqrt.f32 %v746_v56 }
 0x269   :  { %v1169_v57 = vpop.eup %1168  ;;  %v712_v38 = vpop.xlane.xlu1 %711 }
 0x26a   :  { %v793_v16 = vmul.f32 %v1169_v57, %v1626_v29  ;;  %v747_v58 = vmax.f32 %v712_v38, 1e-24 }
 0x26c   :  { %818 = vst.msk [vmem:[%s1816_s5 + $0x78] sm:$0xff] %vm56_vm1, %v793_v16  ;;  %1176 = vrsqrt.f32 %v747_v58 }
 0x26d   :  { %v1171_v60 = vpop.eup %1170  ;;  %v715_v22 = vpop.xlane.xlu0 %714 }
 0x26e   :  { %v794_v62 = vmul.f32 %v1171_v60, %v1632_v35  ;;  %v748_v19 = vmax.f32 %v715_v22, 1e-24 }
 0x270   :  { %819 = vst.msk [vmem:[%s1816_s5 + $0x80] sm:$0xff] %vm56_vm1, %v794_v62  ;;  %1178 = vrsqrt.f32 %v748_v19 }
 0x271   :  { %v1173_v63 = vpop.eup %1172  ;;  %v718_v29 = vpop.xlane.xlu1 %717 }
 0x272   :  { %v795_v2 = vmul.f32 %v1173_v63, %v1638_v42  ;;  %v749_v3 = vmax.f32 %v718_v29, 1e-24 }
 0x274   :  { %820 = vst.msk [vmem:[%s1816_s5 + $0x88] sm:$0xff] %vm56_vm1, %v795_v2  ;;  %1180 = vrsqrt.f32 %v749_v3 }
 0x275   :  { %v1175_v23 = vpop.eup %1174  ;;  %v721_v35 = vpop.xlane.xlu0 %720 }
 0x276   :  { %v796_v5 = vmul.f32 %v1175_v23, %v1644_v48  ;;  %v750_v7 = vmax.f32 %v721_v35, 1e-24 }
 0x278   :  { %821 = vst.msk [vmem:[%s1816_s5 + $0x90] sm:$0xff] %vm56_vm1, %v796_v5  ;;  %1182 = vrsqrt.f32 %v750_v7 }
 0x279   :  { %v1177_v8 = vpop.eup %1176  ;;  %v724_v42 = vpop.xlane.xlu1 %723 }
 0x27a   :  { %v797_v28 = vmul.f32 %v1177_v8, %v1650_v55  ;;  %v751_v9 = vmax.f32 %v724_v42, 1e-24 }
 0x27c   :  { %822 = vst.msk [vmem:[%s1816_s5 + $0x98] sm:$0xff] %vm56_vm1, %v797_v28  ;;  %1184 = vrsqrt.f32 %v751_v9 }
 0x27d   :  { %v1179_v12 = vpop.eup %1178  ;;  %v727_v48 = vpop.xlane.xlu0 %726 }
 0x27e   :  { %v798_v13 = vmul.f32 %v1179_v12, %v1656_v61  ;;  %v752_v33 = vmax.f32 %v727_v48, 1e-24 }
 0x280   :  { %823 = vst.msk [vmem:[%s1816_s5 + $0xa0] sm:$0xff] %vm56_vm1, %v798_v13  ;;  %1186 = vrsqrt.f32 %v752_v33 }
 0x281   :  { %v1181_v15 = vpop.eup %1180 }
 0x282   :  { %v799_v55 = vmul.f32 %v1181_v15, %v1662_v4 }
 0x284   :  { %824 = vst.msk [vmem:[%s1816_s5 + $0xa8] sm:$0xff] %vm56_vm1, %v799_v55 }
 0x285   :  { %v1183_v17 = vpop.eup %1182 }
 0x286   :  { %v800_v0 = vmul.f32 %v1183_v17, %v1668_v10 }
 0x288   :  { %825 = vst.msk [vmem:[%s1816_s5 + $0xb0] sm:$0xff] %vm56_vm1, %v800_v0 }
 0x289   :  { %v1185_v61 = vpop.eup %1184 }
 0x28a   :  { %v801_v39 = vmul.f32 %v1185_v61, %v1674_v18 }
 0x28c   :  { %826 = vst.msk [vmem:[%s1816_s5 + $0xb8] sm:$0xff] %vm56_vm1, %v801_v39 }
 0x28d   :  { %v1187_v4 = vpop.eup %1186 }
 0x28e   :  { %v802_v20 = vmul.f32 %v1187_v4, %v1680_v25 }
 0x290   :  { %827 = vst.msk [vmem:[%s1816_s5 + $0xc0] sm:$0xff] %vm56_vm1, %v802_v20 }

</bundles_post_ra>
